<compile_context>
chip_gen: v7x
topology: tpu7x:2x2x1
jax: 0.10.0
libtpu: 0.0.40
codegen_flags: <defaults>
</compile_context>

<pallas_src>
import math

import jax
import jax.numpy as jnp
from jax.experimental import pallas as pl
from jax.experimental.pallas import tpu as pltpu


def _pair(v):
    return (v, v) if isinstance(v, int) else tuple(v)


def _round_up(x, m):
    return (x + m - 1) // m * m


def _make_conv_relu_kernel(offs, cin_p, tl):
    """offs: static flat tap offsets; cin_p: sublane-padded Cin; tl: lane tile."""

    def kernel(x0_ref, x1_ref, w_ref, b_ref, o_ref, xw_ref, xt_ref):
        # x0_ref / x1_ref : (Cin_p, tl)     current tile + next tile (halo)
        # w_ref           : (Cout, T*Cin_p) im2col weights (resident, fetched once)
        # b_ref           : (Cout, 1)
        # o_ref           : (Cout, tl)      lane-dense output tile
        # xw_ref          : (Cin_p, 2*tl)   contiguous [tile | halo] window (VMEM)
        # xt_ref          : (T*Cin_p, tl)   in-kernel im2col gather (VMEM)
        xw_ref[:, :tl] = x0_ref[...]
        xw_ref[:, tl:] = x1_ref[...]
        for t, off in enumerate(offs):          # static python loop -> unrolled
            xt_ref[t * cin_p:(t + 1) * cin_p, :] = xw_ref[:, off:off + tl]
        # Single fused MXU matmul, K = T*Cin_p, f32 accumulation.
        acc = jnp.dot(w_ref[...], xt_ref[...],
                      preferred_element_type=jnp.float32)
        acc = acc + b_ref[...]                  # bias broadcast over the lane axis
        o_ref[...] = jnp.maximum(acc, 0.0)      # fused ReLU

    return kernel


def conv2d_relu(x, w, b, *, stride=1, padding=0, dilation=1,
                tile_l=512, compute_dtype=jnp.float32):
    """Fused Conv2d(bias=True) + ReLU.

    x: (B, Cin, H, W) float32 (NCHW, as PyTorch); w: (Cout, Cin, KH, KW) (OIHW);
    b: (Cout,).  Returns (B, Cout, H_out, W_out) float32.
    """
    B, Cin, H, W = x.shape
    Cout, Cin_w, KH, KW = w.shape
    assert Cin_w == Cin, (Cin_w, Cin)
    sh, sw = _pair(stride)
    ph, pw = _pair(padding)
    dh, dw = _pair(dilation)

    Hp, Wp = H + 2 * ph, W + 2 * pw
    H1 = Hp - dh * (KH - 1)                     # stride-1 output height
    W1 = Wp - dw * (KW - 1)                     # stride-1 output width
    assert H1 >= 1 and W1 >= 1, "kernel does not fit inside the padded input"
    H_out = (H1 - 1) // sh + 1
    W_out = (W1 - 1) // sw + 1

    isz = jnp.dtype(compute_dtype).itemsize
    T = KH * KW
    # Align channels to the packed sublane tile (8 for f32, 16 for bf16) so the
    # in-kernel im2col gather only touches whole sublane groups.
    Cin_p = _round_up(Cin, 8 * (4 // isz))

    # Flat tap offsets into the padded, row-major flattened image.
    offs = tuple(kh * dh * Wp + kw * dw for kh in range(KH) for kw in range(KW))
    max_off = max(offs)

    # "Wide" stride-1 output: H1 rows of Wp columns (the last Wp-W1 columns of
    # each row come from wrap-around taps and are cropped afterwards).
    Lw = H1 * Wp
    tl = max(min(_round_up(tile_l, 128), _round_up(Lw, 128)),
             _round_up(max(max_off, 1), 128))   # the halo must fit in one tile
    n_lt = -(-Lw // tl)
    Lw_pad = n_lt * tl
    Lx = (n_lt + 1) * tl                        # flat input length incl. halo tile

    # Host-side prep: ONE zero-padded copy of x, flattened (no HBM tap stack).
    xp = jnp.pad(x.astype(compute_dtype),
                 ((0, 0), (0, Cin_p - Cin), (ph, ph), (pw, pw)))
    xpf = xp.reshape(B, Cin_p, Hp * Wp)
    xpf = jnp.pad(xpf, ((0, 0), (0, 0), (0, Lx - Hp * Wp)))

    # im2col weight: row index = t*Cin_p + ci with t = kh*KW + kw (matches the
    # gather order in the kernel); zero rows for the channel padding.
    wk = jnp.pad(w, ((0, 0), (0, Cin_p - Cin), (0, 0), (0, 0)))
    wk = jnp.transpose(wk, (0, 2, 3, 1)).reshape(Cout, T * Cin_p)
    wk = wk.astype(compute_dtype)
    bk = b.reshape(Cout, 1).astype(jnp.float32)

    # Explicit VMEM budget (double-buffered streams + resident weights/bias +
    # scratch), clamped to stay well inside v7x's 64 MiB.
    cout8 = _round_up(Cout, 8)
    est = (2 * 2 * Cin_p * tl * isz                        # x0 / x1 streams
           + 2 * cout8 * _round_up(T * Cin_p, 128) * isz   # weights
           + 2 * 8 * 128 * 4                               # bias
           + 2 * cout8 * tl * 4                            # output tiles
           + Cin_p * 2 * tl * isz                          # xw scratch
           + T * Cin_p * tl * isz)                         # xt scratch
    vmem_limit = int(min(max(2 * est, 16 * 2 ** 20), 48 * 2 ** 20))

    out = pl.pallas_call(
        _make_conv_relu_kernel(offs, Cin_p, tl),
        out_shape=jax.ShapeDtypeStruct((B, Cout, Lw_pad), jnp.float32),
        grid=(B, n_lt),
        in_specs=[
            pl.BlockSpec((None, Cin_p, tl), lambda bb, lt: (bb, 0, lt)),      # tile
            pl.BlockSpec((None, Cin_p, tl), lambda bb, lt: (bb, 0, lt + 1)),  # halo
            pl.BlockSpec((Cout, T * Cin_p), lambda bb, lt: (0, 0)),           # W
            pl.BlockSpec((Cout, 1), lambda bb, lt: (0, 0)),                   # b
        ],
        out_specs=pl.BlockSpec((None, Cout, tl), lambda bb, lt: (bb, 0, lt)),
        scratch_shapes=[
            pltpu.VMEM((Cin_p, 2 * tl), compute_dtype),
            pltpu.VMEM((T * Cin_p, tl), compute_dtype),
        ],
        compiler_params=pltpu.CompilerParams(
            dimension_semantics=("parallel", "parallel"),
            vmem_limit_bytes=vmem_limit),
    )(xpf, xpf, wk, bk)

    # Crop the wide garbage columns, then apply stride / final output crop.
    out = out[:, :, :Lw].reshape(B, Cout, H1, Wp)
    out = out[:, :, ::sh, ::sw][:, :, :H_out, :W_out]
    return out


class ConvReLU:
    """JAX/Pallas port of PDNet's `conv_relu` (nn.Conv2d(bias=True) + nn.ReLU)."""

    def __init__(self, key, in_channel, out_channel, kernel_size,
                 dilation_rate=1, padding=0, stride=1):
        kh, kw = _pair(kernel_size)
        fan_in = in_channel * kh * kw
        bound = 1.0 / math.sqrt(fan_in)         # PyTorch default Conv2d init
        k_w, k_b = jax.random.split(key)
        self.w = jax.random.uniform(k_w, (out_channel, in_channel, kh, kw),
                                    jnp.float32, -bound, bound)
        self.b = jax.random.uniform(k_b, (out_channel,), jnp.float32,
                                    -bound, bound)
        self.stride = stride
        self.padding = padding
        self.dilation = dilation_rate

    def __call__(self, x, *, compute_dtype=jnp.float32):
        return conv2d_relu(x, self.w, self.b, stride=self.stride,
                           padding=self.padding, dilation=self.dilation,
                           compute_dtype=compute_dtype)


def conv_relu_ref(x, w, b, *, stride=1, padding=0, dilation=1):
    """Plain-JAX reference (same semantics as the PyTorch module)."""
    sh, sw = _pair(stride)
    ph, pw = _pair(padding)
    dh, dw = _pair(dilation)
    y = jax.lax.conv_general_dilated(
        x, w, window_strides=(sh, sw), padding=[(ph, ph), (pw, pw)],
        rhs_dilation=(dh, dw), dimension_numbers=("NCHW", "OIHW", "NCHW"),
        precision=jax.lax.Precision.HIGHEST)
    return jnp.maximum(y + b[None, :, None, None], 0.0)


if __name__ == "__main__":
    key = jax.random.PRNGKey(0)
    B, Cin, H, W = 2, 4, 16, 16
    x = jax.random.normal(jax.random.fold_in(key, 999), (B, Cin, H, W),
                          jnp.float32)

    # (out_channel, kernel_size, dilation_rate, padding, stride)
    configs = [
        (8, 3, 1, 1, 1),    # standard PDNet 3x3 'same' conv_relu
        (12, 3, 2, 2, 1),   # dilated 3x3 ('same' with dilation, as in GhostBlock)
        (6, 1, 1, 0, 1),    # 1x1 pointwise
        (8, 3, 1, 1, 2),    # strided
    ]

    for i, (cout, k, d, p, s) in enumerate(configs):
        mod = ConvReLU(jax.random.fold_in(key, i), Cin, cout, k,
                       dilation_rate=d, padding=p, stride=s)
        out = jax.jit(mod.__call__)(x)
        jax.block_until_ready(out)
        ref = conv_relu_ref(x, mod.w, mod.b, stride=s, padding=p, dilation=d)
        assert out.shape == ref.shape, (i, out.shape, ref.shape)
        assert bool(jnp.all(jnp.isfinite(out))), f"config {i}: non-finite output"
        err = float(jnp.max(jnp.abs(out - ref)))
        assert err < 2e-2, f"config {i}: max abs err {err}"

    # Optional bf16-compute path (f32 accumulation), looser tolerance.
    mod = ConvReLU(jax.random.fold_in(key, 0), Cin, 8, 3,
                   dilation_rate=1, padding=1, stride=1)
    out_bf16 = mod(x, compute_dtype=jnp.bfloat16)
    jax.block_until_ready(out_bf16)
    ref = conv_relu_ref(x, mod.w, mod.b, stride=1, padding=1, dilation=1)
    assert float(jnp.max(jnp.abs(out_bf16 - ref))) < 1.5e-1

    print("KERNEL_OK")
</pallas_src>

<mosaic_0001>
module attributes {stable_mosaic.version = 11 : i64} {
  func.func @kernel(%arg0: i32, %arg1: i32, %arg2: memref<1x8x384xf32, #tpu.memory_space<vmem>>, %arg3: memref<1x8x384xf32, #tpu.memory_space<vmem>>, %arg4: memref<8x72xf32, #tpu.memory_space<vmem>>, %arg5: memref<8x1xf32, #tpu.memory_space<vmem>>, %arg6: memref<1x8x384xf32, #tpu.memory_space<vmem>>, %arg7: memref<8x768xf32, #tpu.memory_space<vmem>>, %arg8: memref<72x384xf32, #tpu.memory_space<vmem>>) attributes {dimension_semantics = [#tpu.dimension_semantics<parallel>, #tpu.dimension_semantics<parallel>], iteration_bounds = array<i64: 2, 1>, scalar_prefetch = 0 : i64, scratch_operands = 2 : i64, tpu.core_type = #tpu.core_type<tc>, window_params = [{transform_indices = @transform_0, window_bounds = array<i64: 1, 8, 384>}, {transform_indices = @transform_1, window_bounds = array<i64: 1, 8, 384>}, {pipeline_mode = #tpu.pipeline_mode<synchronous>, transform_indices = @transform_2, window_bounds = array<i64: 8, 72>}, {pipeline_mode = #tpu.pipeline_mode<synchronous>, transform_indices = @transform_3, window_bounds = array<i64: 8, 1>}, {transform_indices = @transform_4, window_bounds = array<i64: 1, 8, 384>}]} {
    %c0 = arith.constant 0 : index
    %c0_0 = arith.constant 0 : index
    %c0_1 = arith.constant 0 : index
    %0 = vector.load %arg2[%c0, %c0_0, %c0_1] : memref<1x8x384xf32, #tpu.memory_space<vmem>>, vector<1x8x384xf32>
    %1 = vector.shape_cast %0 : vector<1x8x384xf32> to vector<8x384xf32>
    %c0_2 = arith.constant 0 : index
    %c0_3 = arith.constant 0 : index
    %2 = vector.load %arg7[%c0_2, %c0_3] : memref<8x768xf32, #tpu.memory_space<vmem>>, vector<8x384xf32>
    tpu.vector_store %arg7[%c0_2, %c0_3], %1 {strides = array<i32>} : memref<8x768xf32, #tpu.memory_space<vmem>>, vector<8x384xf32>,
    %c0_4 = arith.constant 0 : index
    %c0_5 = arith.constant 0 : index
    %c0_6 = arith.constant 0 : index
    %3 = vector.load %arg3[%c0_4, %c0_5, %c0_6] : memref<1x8x384xf32, #tpu.memory_space<vmem>>, vector<1x8x384xf32>
    %4 = vector.shape_cast %3 : vector<1x8x384xf32> to vector<8x384xf32>
    %c0_7 = arith.constant 0 : index
    %c384 = arith.constant 384 : index
    %5 = vector.load %arg7[%c0_7, %c384] : memref<8x768xf32, #tpu.memory_space<vmem>>, vector<8x384xf32>
    tpu.vector_store %arg7[%c0_7, %c384], %4 {strides = array<i32>} : memref<8x768xf32, #tpu.memory_space<vmem>>, vector<8x384xf32>,
    %c0_8 = arith.constant 0 : index
    %c0_9 = arith.constant 0 : index
    %6 = vector.load %arg7[%c0_8, %c0_9] : memref<8x768xf32, #tpu.memory_space<vmem>>, vector<8x384xf32>
    %c0_10 = arith.constant 0 : index
    %c0_11 = arith.constant 0 : index
    %7 = vector.load %arg8[%c0_10, %c0_11] : memref<72x384xf32, #tpu.memory_space<vmem>>, vector<8x384xf32>
    tpu.vector_store %arg8[%c0_10, %c0_11], %6 {strides = array<i32>} : memref<72x384xf32, #tpu.memory_space<vmem>>, vector<8x384xf32>,
    %c0_12 = arith.constant 0 : index
    %c1 = arith.constant 1 : index
    %8 = vector.load %arg7[%c0_12, %c1] : memref<8x768xf32, #tpu.memory_space<vmem>>, vector<8x384xf32>
    %c8 = arith.constant 8 : index
    %c0_13 = arith.constant 0 : index
    %9 = vector.load %arg8[%c8, %c0_13] : memref<72x384xf32, #tpu.memory_space<vmem>>, vector<8x384xf32>
    tpu.vector_store %arg8[%c8, %c0_13], %8 {strides = array<i32>} : memref<72x384xf32, #tpu.memory_space<vmem>>, vector<8x384xf32>,
    %c0_14 = arith.constant 0 : index
    %c2 = arith.constant 2 : index
    %10 = vector.load %arg7[%c0_14, %c2] : memref<8x768xf32, #tpu.memory_space<vmem>>, vector<8x384xf32>
    %c16 = arith.constant 16 : index
    %c0_15 = arith.constant 0 : index
    %11 = vector.load %arg8[%c16, %c0_15] : memref<72x384xf32, #tpu.memory_space<vmem>>, vector<8x384xf32>
    tpu.vector_store %arg8[%c16, %c0_15], %10 {strides = array<i32>} : memref<72x384xf32, #tpu.memory_space<vmem>>, vector<8x384xf32>,
    %c0_16 = arith.constant 0 : index
    %c18 = arith.constant 18 : index
    %12 = vector.load %arg7[%c0_16, %c18] : memref<8x768xf32, #tpu.memory_space<vmem>>, vector<8x384xf32>
    %c24 = arith.constant 24 : index
    %c0_17 = arith.constant 0 : index
    %13 = vector.load %arg8[%c24, %c0_17] : memref<72x384xf32, #tpu.memory_space<vmem>>, vector<8x384xf32>
    tpu.vector_store %arg8[%c24, %c0_17], %12 {strides = array<i32>} : memref<72x384xf32, #tpu.memory_space<vmem>>, vector<8x384xf32>,
    %c0_18 = arith.constant 0 : index
    %c19 = arith.constant 19 : index
    %14 = vector.load %arg7[%c0_18, %c19] : memref<8x768xf32, #tpu.memory_space<vmem>>, vector<8x384xf32>
    %c32 = arith.constant 32 : index
    %c0_19 = arith.constant 0 : index
    %15 = vector.load %arg8[%c32, %c0_19] : memref<72x384xf32, #tpu.memory_space<vmem>>, vector<8x384xf32>
    tpu.vector_store %arg8[%c32, %c0_19], %14 {strides = array<i32>} : memref<72x384xf32, #tpu.memory_space<vmem>>, vector<8x384xf32>,
    %c0_20 = arith.constant 0 : index
    %c20 = arith.constant 20 : index
    %16 = vector.load %arg7[%c0_20, %c20] : memref<8x768xf32, #tpu.memory_space<vmem>>, vector<8x384xf32>
    %c40 = arith.constant 40 : index
    %c0_21 = arith.constant 0 : index
    %17 = vector.load %arg8[%c40, %c0_21] : memref<72x384xf32, #tpu.memory_space<vmem>>, vector<8x384xf32>
    tpu.vector_store %arg8[%c40, %c0_21], %16 {strides = array<i32>} : memref<72x384xf32, #tpu.memory_space<vmem>>, vector<8x384xf32>,
    %c0_22 = arith.constant 0 : index
    %c36 = arith.constant 36 : index
    %18 = vector.load %arg7[%c0_22, %c36] : memref<8x768xf32, #tpu.memory_space<vmem>>, vector<8x384xf32>
    %c48 = arith.constant 48 : index
    %c0_23 = arith.constant 0 : index
    %19 = vector.load %arg8[%c48, %c0_23] : memref<72x384xf32, #tpu.memory_space<vmem>>, vector<8x384xf32>
    tpu.vector_store %arg8[%c48, %c0_23], %18 {strides = array<i32>} : memref<72x384xf32, #tpu.memory_space<vmem>>, vector<8x384xf32>,
    %c0_24 = arith.constant 0 : index
    %c37 = arith.constant 37 : index
    %20 = vector.load %arg7[%c0_24, %c37] : memref<8x768xf32, #tpu.memory_space<vmem>>, vector<8x384xf32>
    %c56 = arith.constant 56 : index
    %c0_25 = arith.constant 0 : index
    %21 = vector.load %arg8[%c56, %c0_25] : memref<72x384xf32, #tpu.memory_space<vmem>>, vector<8x384xf32>
    tpu.vector_store %arg8[%c56, %c0_25], %20 {strides = array<i32>} : memref<72x384xf32, #tpu.memory_space<vmem>>, vector<8x384xf32>,
    %c0_26 = arith.constant 0 : index
    %c38 = arith.constant 38 : index
    %22 = vector.load %arg7[%c0_26, %c38] : memref<8x768xf32, #tpu.memory_space<vmem>>, vector<8x384xf32>
    %c64 = arith.constant 64 : index
    %c0_27 = arith.constant 0 : index
    %23 = vector.load %arg8[%c64, %c0_27] : memref<72x384xf32, #tpu.memory_space<vmem>>, vector<8x384xf32>
    tpu.vector_store %arg8[%c64, %c0_27], %22 {strides = array<i32>} : memref<72x384xf32, #tpu.memory_space<vmem>>, vector<8x384xf32>,
    %c0_28 = arith.constant 0 : index
    %c0_29 = arith.constant 0 : index
    %24 = vector.load %arg4[%c0_28, %c0_29] : memref<8x72xf32, #tpu.memory_space<vmem>>, vector<8x72xf32>
    %c0_30 = arith.constant 0 : index
    %c0_31 = arith.constant 0 : index
    %25 = vector.load %arg8[%c0_30, %c0_31] : memref<72x384xf32, #tpu.memory_space<vmem>>, vector<72x384xf32>
    %cst = arith.constant dense<0.000000e+00> : vector<8x384xf32>
    %26 = tpu.matmul %24, %25, %cst {dimension_numbers = #tpu.dot_dimension_numbers<[1], [0], [0], [1], [0, 0, 1, 1], [], []>} : vector<8x72xf32>, vector<72x384xf32>, vector<8x384xf32> -> vector<8x384xf32>
    %c0_32 = arith.constant 0 : index
    %c0_33 = arith.constant 0 : index
    %27 = vector.load %arg5[%c0_32, %c0_33] : memref<8x1xf32, #tpu.memory_space<vmem>>, vector<8x1xf32>
    %28 = vector.broadcast %27 : vector<8x1xf32> to vector<8x384xf32>
    %29 = arith.addf %26, %28 : vector<8x384xf32>
    %cst_34 = arith.constant 0.000000e+00 : f32
    %30 = vector.broadcast %cst_34 : f32 to vector<8x384xf32>
    %31 = arith.maximumf %29, %30 : vector<8x384xf32>
    %c0_35 = arith.constant 0 : index
    %c0_36 = arith.constant 0 : index
    %c0_37 = arith.constant 0 : index
    %32 = vector.load %arg6[%c0_35, %c0_36, %c0_37] : memref<1x8x384xf32, #tpu.memory_space<vmem>>, vector<1x8x384xf32>
    %33 = vector.shape_cast %32 : vector<1x8x384xf32> to vector<8x384xf32>
    %34 = vector.shape_cast %31 : vector<8x384xf32> to vector<1x8x384xf32>
    tpu.vector_store %arg6[%c0_35, %c0_36, %c0_37], %34 {strides = array<i32>} : memref<1x8x384xf32, #tpu.memory_space<vmem>>, vector<1x8x384xf32>,
    return
  }
  func.func @transform_0(%arg0: i32, %arg1: i32) -> (i32, i32, i32) {
    %c0_i32 = arith.constant 0 : i32
    %c0_i32_0 = arith.constant 0 : i32
    return %arg0, %c0_i32, %arg1 : i32, i32, i32
  }
  func.func @transform_1(%arg0: i32, %arg1: i32) -> (i32, i32, i32) {
    %c1_i32 = arith.constant 1 : i32
    %0 = arith.addi %arg1, %c1_i32 : i32
    %c0_i32 = arith.constant 0 : i32
    %c0_i32_0 = arith.constant 0 : i32
    return %arg0, %c0_i32, %0 : i32, i32, i32
  }
  func.func @transform_2(%arg0: i32, %arg1: i32) -> (i32, i32) {
    %c0_i32 = arith.constant 0 : i32
    %c0_i32_0 = arith.constant 0 : i32
    %c0_i32_1 = arith.constant 0 : i32
    return %c0_i32, %c0_i32_0 : i32, i32
  }
  func.func @transform_3(%arg0: i32, %arg1: i32) -> (i32, i32) {
    %c0_i32 = arith.constant 0 : i32
    %c0_i32_0 = arith.constant 0 : i32
    %c0_i32_1 = arith.constant 0 : i32
    return %c0_i32, %c0_i32_0 : i32, i32
  }
  func.func @transform_4(%arg0: i32, %arg1: i32) -> (i32, i32, i32) {
    %c0_i32 = arith.constant 0 : i32
    %c0_i32_0 = arith.constant 0 : i32
    return %arg0, %c0_i32, %arg1 : i32, i32, i32
  }
}

</mosaic_0001>

<bundles_post_ra>
// kernel: a_call__.1
= control target key start
LH: loop header
LB: loop body
LE: loop exit
PB: predicated region body
PF: predicated region fallthrough
CT: control target
= control target key end

     0   :  { %s1041_s15 = smov 0   ;;  %s1043_s16 = smov 0   ;;  %s1128_s0 = inlined_call_operand.vmem [shape: f32[2,8,768], index: 0, kind: input, shape index: {}, may-alias: {0,1}]   ;;  %s1129_s1 = inlined_call_operand.vmem [shape: f32[2,8,768], index: 1, kind: input, shape index: {}, may-alias: {0,1}]   ;;  %s1130_s2 = inlined_call_operand.vmem [shape: f32[8,72], index: 2, kind: input, shape index: {}]   ;;  %s1131_s3 = inlined_call_operand.vmem [shape: f32[8,1], index: 3, kind: input, shape index: {}]   ;;  %s1132_s4 = inlined_call_operand.vmem [shape: f32[2,8,384], index: 4, kind: output, shape index: {}]  }
   0x1   :  { %s1045_s17 = smov 0  }
   0x2 LB: > { %s26_s18 = sadd.s32 1, %s998_s16  ;;  %p800_p0 = scmp.ge.s32.totalorder %s1002_s17, 1  ;;  %s1002_s17 = sphi %s1045_s17, %s14_s17   ;;  %s998_s16 = sphi %s1043_s16, %s1134_s16   ;;  %s994_s15 = sphi %s1041_s15, %s1133_s15  }
   0x3   : > { %p28_p1 = scmp.ge.s32.totalorder %s26_s18, 2  ;;  %p204_p2 = scmp.lt.s32.totalorder %s1002_s17, 3 }
   0x5   : > { %s1136_s18 = smov (%p28_p1, %s26_s18), 0  ;;  %p205_p3 = pnand %p800_p0, %p204_p2 }
   0x6   : > { %p249_p4 = scmp.lt.s32.totalorder (!%p205_p3), %s994_s15, 1  ;;  %v1004_v0 = vmov (!%p205_p3), 0.0|0.0   ;;  %s1005_s27 = smov (!%p205_p3), 126   ;;  %v1010_v7 = vmov (!%p205_p3), 0.0   ;;  %vm1013_vm0 = vmmov (!%p205_p3), 0   ;;  %v1014_v8 = vmov (!%p205_p3), 0  }
   0x7   : > { %208 = sbr.rel (%p205_p3) target bundleno = 388 (0x184), region = 36  ;;  %857 = vmatprep.subr.bf16.mxu1 (!%p205_p3), %v1004_v0  ;;  %s1006_s28 = smov (!%p205_p3), 127   ;;  %608 = vmatprep.mubr.f32.mxu0 (!%p205_p3), %v1010_v7  ;;  %v534_v9 = vld [vmem:[%s1131_s3] sm:$0xff] (!%p205_p3)  ;;  %vm314_vm1 = vcmask (!%p205_p3), 1039360   ;;  %vm340_vm2 = vcmask (!%p205_p3), 1031168   ;;  %vm366_vm3 = vcmask (!%p205_p3), 900096  }
   0x8   : > { %s1007_s29 = smov (!%p205_p3), 110   ;;  %s1008_s30 = smov (!%p205_p3), 108   ;;  %838 = vmatprep.mubr.msk.f32.mxu1 (!%p205_p3), %vm1013_vm0, %v1010_v7  ;;  %979 = vset.pattern.permute.xlu0 (!%p205_p3), %v1014_v8  ;;  %vm392_vm4 = vcmask (!%p205_p3), 891904   ;;  %vm418_vm5 = vcmask (!%p205_p3), 883712   ;;  %vm444_vm6 = vcmask (!%p205_p3), 752640   ;;  %vm470_vm7 = vcmask (!%p205_p3), 744448  }
   0x9   : > { %s1009_s5 = smov (!%p205_p3), 109   ;;  %s1011_s6 = smov (!%p205_p3), 91   ;;  %vm496_vm8 = vcmask (!%p205_p3), 736256   ;;  %vm540_vm9 = vcmask (!%p205_p3), 588800  }
   0xa   : > { %s1012_s7 = smov (!%p205_p3), 92   ;;  %s1015_s8 = smov (!%p205_p3), 90  }
   0xe   : > { %s1138_s15 = smov (!%p249_p4, %s994_s15), 1 }
   0xf   : > { %s869_s19 = smul.u32 48, %s1138_s15 }
  0x10   : > { %s871_s13 = smul.u32 24, %s1138_s15 }
  0x11   : > { %s256_s22 = scalar_lea.vmem %s1128_s0, %s869_s19  ;;  %s809_s23 = sadd.s32 24, %s869_s19 }
  0x12   : > { %v281_v1 = vld [vmem:[%s256_s22 + $0x8] sm:$0xff]  ;;  %v1066_v2 = vld [vmem:[%s256_s22 + $0x10] sm:$0xff]  ;;  %s267_s26 = scalar_lea.vmem %s1129_s1, %s809_s23  ;;  %v1071_v3 = vld [vmem:[%s256_s22] sm:$0xff]  ;;  %s278_s20 = scalar_lea.vmem %s1132_s4, %s871_s13 }
  0x13   : > { %v914_v4 = vpack.i.bf16 %v1066_v2, %v281_v1  ;;  %v286_v5 = vld [vmem:[%s267_s26] sm:$0xff] }
  0x14   : > { %v924_v6 = vpack.i.bf16 %v286_v5, %v1071_v3 }
  0x15   : > { %915 = vrot.lane.b32.xlu1 %v914_v4, %s1005_s27  ;;  %910 = vrot.lane.b32.xlu0 %v914_v4, %s1006_s28 }
  0x19   : > { %920 = vrot.lane.b32.xlu1 %v914_v4, %s1007_s29  ;;  %925 = vrot.lane.b32.xlu0 %v924_v6, %s1006_s28 }
  0x1d   : > { %940 = vrot.lane.b32.xlu1 %v924_v6, %s1007_s29  ;;  %930 = vrot.lane.b32.xlu0 %v924_v6, %s1005_s27 }
  0x21   : > { %945 = vrot.lane.b32.xlu1 %v914_v4, %s1008_s30  ;;  %935 = vrot.lane.b32.xlu0 %v914_v4, %s1009_s5 }
  0x25   : > { %955 = vrot.lane.b32.xlu1 %v924_v6, %s1008_s30  ;;  %950 = vrot.lane.b32.xlu0 %v924_v6, %s1009_s5 }
  0x29   : > { %965 = vrot.lane.b32.xlu1 %v914_v4, %s1011_s6  ;;  %960 = vrot.lane.b32.xlu0 %v914_v4, %s1012_s7 }
  0x2d   : > { %975 = vrot.lane.b32.xlu1 %v924_v6, %s1011_s6  ;;  %970 = vrot.lane.b32.xlu0 %v924_v6, %s1012_s7 }
  0x31   : > { %492 = vrot.lane.b32.xlu1 %v1066_v2, %s1015_s8  ;;  %490 = vrot.lane.b32.xlu0 %v281_v1, %s1015_s8 }
  0x35   : > { %494 = vrot.lane.b32.xlu1 %v286_v5, %s1015_s8  ;;  %488 = vrot.lane.b32.xlu0 %v1071_v3, %s1015_s8 }
  0x39   : > { %537 = vperm.xlu0 %979, %v534_v9  }
  0x87   : > { %v916_v10 = vpop.permute.xlu1 %915  ;;  %v911_v11 = vpop.permute.xlu0 %910 }
  0x88   : > { %v913_v12 = vunpack.i.h.bf16 %v911_v11  ;;  %v912_v13 = vunpack.i.l.bf16 %v911_v11  ;;  %v918_v14 = vunpack.i.h.bf16 %v916_v10  ;;  %v917_v15 = vunpack.i.l.bf16 %v916_v10 }
  0x8a   : > { %v316_v16 = vsel %vm314_vm1, %v912_v13, %v913_v12  ;;  %v342_v26 = vsel %vm340_vm2, %v917_v15, %v918_v14 }
  0x8b   : > { %v921_v17 = vpop.permute.xlu1 %920  ;;  %v926_v18 = vpop.permute.xlu0 %925  ;;  %v841_v19 = vpack.c.bf16 %v316_v16, %v281_v1 }
  0x8c   : > { %v923_v20 = vunpack.i.h.bf16 %v921_v17  ;;  %v922_v21 = vunpack.i.l.bf16 %v921_v17  ;;  %v928_v22 = vunpack.i.h.bf16 %v926_v18  ;;  %v927_v23 = vunpack.i.l.bf16 %v926_v18 }
  0x8d   : > { %842 = vmatprep.subr.bf16.mxu0 %v841_v19 }
  0x8e   : > { %v315_v24 = vsel %vm314_vm1, %v927_v23, %v912_v13  ;;  %v317_v25 = vsel %vm314_vm1, %v913_v12, %v928_v22  ;;  %v368_v27 = vsel %vm366_vm3, %v922_v21, %v923_v20 }
  0x8f   : > { %v941_v28 = vpop.permute.xlu1 %940  ;;  %v931_v29 = vpop.permute.xlu0 %930  ;;  %v843_v30 = vpack.c.bf16 %v315_v24, %v1071_v3  ;;  %v858_v31 = vpack.c.bf16 %v317_v25, %v1066_v2  ;;  %v845_v32 = vpack.c.bf16 %v368_v27, %v342_v26  ;;  %v506_v27 = vld [vmem:[%s1130_s2] sm:$0xff] }
  0x90   : > { %v943_v33 = vunpack.i.h.bf16 %v941_v28  ;;  %v942_v34 = vunpack.i.l.bf16 %v941_v28  ;;  %v933_v35 = vunpack.i.h.bf16 %v931_v29  ;;  %v932_v36 = vunpack.i.l.bf16 %v931_v29 }
  0x91   : > { %844 = vmatpush1.bf16.msra.mxu0 %v843_v30  ;;  %859 = vmatpush3.bf16.msra.mxu1 %v858_v31 }
  0x92   : > { %846 = vmatprep.subr.bf16.mxu0 %v845_v32  ;;  %860 = vmatprep.subr.bf16.mxu1 %v1004_v0  ;;  %v341_v37 = vsel %vm340_vm2, %v932_v36, %v917_v15  ;;  %v367_v38 = vsel %vm366_vm3, %v942_v34, %v922_v21  ;;  %v343_v39 = vsel %vm340_vm2, %v918_v14, %v933_v35 }
  0x93   : > { %v946_v40 = vpop.permute.xlu1 %945  ;;  %v936_v41 = vpop.permute.xlu0 %935  ;;  %v847_v42 = vpack.c.bf16 %v367_v38, %v341_v37  ;;  %v369_v43 = vsel %vm366_vm3, %v923_v20, %v943_v33 }
  0x94   : > { %v948_v44 = vunpack.i.h.bf16 %v946_v40  ;;  %v947_v45 = vunpack.i.l.bf16 %v946_v40  ;;  %v938_v46 = vunpack.i.h.bf16 %v936_v41  ;;  %v937_v47 = vunpack.i.l.bf16 %v936_v41 }
  0x95   : > { %848 = vmatpush1.bf16.msra.mxu0 %v847_v42  ;;  %v861_v48 = vpack.c.bf16 %v369_v43, %v343_v39 }
  0x96   : > { %v394_v49 = vsel %vm392_vm4, %v937_v47, %v938_v46  ;;  %v420_v50 = vsel %vm418_vm5, %v947_v45, %v948_v44 }
  0x97   : > { %862 = vmatpush3.bf16.msra.mxu1 %v861_v48  ;;  %v956_v51 = vpop.permute.xlu1 %955  ;;  %v951_v52 = vpop.permute.xlu0 %950  ;;  %v849_v53 = vpack.c.bf16 %v420_v50, %v394_v49 }
  0x98   : > { %v958_v54 = vunpack.i.h.bf16 %v956_v51  ;;  %v957_v55 = vunpack.i.l.bf16 %v956_v51  ;;  %v953_v56 = vunpack.i.h.bf16 %v951_v52  ;;  %v952_v57 = vunpack.i.l.bf16 %v951_v52  ;;  %863 = vmatprep.subr.bf16.mxu1 %v1004_v0 }
  0x99   : > { %850 = vmatprep.subr.bf16.mxu0 %v849_v53 }
  0x9a   : > { %v393_v58 = vsel %vm392_vm4, %v952_v57, %v937_v47  ;;  %v419_v59 = vsel %vm418_vm5, %v957_v55, %v947_v45  ;;  %v395_v60 = vsel %vm392_vm4, %v938_v46, %v953_v56  ;;  %v421_v61 = vsel %vm418_vm5, %v948_v44, %v958_v54 }
  0x9b   : > { %v966_v62 = vpop.permute.xlu1 %965  ;;  %v961_v63 = vpop.permute.xlu0 %960  ;;  %v851_v1 = vpack.c.bf16 %v419_v59, %v393_v58  ;;  %v864_v2 = vpack.c.bf16 %v421_v61, %v395_v60 }
  0x9c   : > { %v968_v3 = vunpack.i.h.bf16 %v966_v62  ;;  %v967_v4 = vunpack.i.l.bf16 %v966_v62  ;;  %v963_v5 = vunpack.i.h.bf16 %v961_v63  ;;  %v962_v6 = vunpack.i.l.bf16 %v961_v63 }
  0x9d   : > { %852 = vmatpush1.bf16.msra.mxu0 %v851_v1  ;;  %865 = vmatpush3.bf16.msra.mxu1 %v864_v2 }
  0x9e   : > { %v446_v8 = vsel %vm444_vm6, %v962_v6, %v963_v5  ;;  %v472_v9 = vsel %vm470_vm7, %v967_v4, %v968_v3  ;;  %866 = vmatprep.subr.bf16.mxu1 %v1004_v0 }
  0x9f   : > { %v976_v10 = vpop.permute.xlu1 %975  ;;  %v971_v11 = vpop.permute.xlu0 %970  ;;  %v853_v12 = vpack.c.bf16 %v472_v9, %v446_v8 }
  0xa0   : > { %v978_v13 = vunpack.i.h.bf16 %v976_v10  ;;  %v977_v14 = vunpack.i.l.bf16 %v976_v10  ;;  %v973_v15 = vunpack.i.h.bf16 %v971_v11  ;;  %v972_v16 = vunpack.i.l.bf16 %v971_v11 }
  0xa1   : > { %854 = vmatprep.subr.bf16.mxu0 %v853_v12 }
  0xa2   : > { %v445_v17 = vsel %vm444_vm6, %v972_v16, %v962_v6  ;;  %v471_v18 = vsel %vm470_vm7, %v977_v14, %v967_v4  ;;  %v447_v19 = vsel %vm444_vm6, %v963_v5, %v973_v15  ;;  %v473_v20 = vsel %vm470_vm7, %v968_v3, %v978_v13 }
  0xa3   : > { %v493_v21 = vpop.permute.xlu1 %492  ;;  %v491_v22 = vpop.permute.xlu0 %490  ;;  %v855_v0 = vpack.c.bf16 %v471_v18, %v445_v17  ;;  %v867_v23 = vpack.c.bf16 %v473_v20, %v447_v19 }
  0xa4   : > { %v498_v24 = vsel %vm496_vm8, %v491_v22, %v493_v21 }
  0xa5   : > { %856 = vmatpush1.bf16.msra.mxu0 %v855_v0  ;;  %868 = vmatpush3.bf16.msra.mxu1 %v867_v23 }
  0xa6   : > { %560 = vmatprep.subr.mxu0 %v498_v24  ;;  %836 = vmatprep.subr.mxu1 %v1010_v7 }
  0xa7   : > { %v495_v25 = vpop.permute.xlu1 %494  ;;  %v489_v26 = vpop.permute.xlu0 %488 }
  0xa8   : > { %v497_v28 = vsel %vm496_vm8, %v489_v26, %v491_v22  ;;  %v499_v29 = vsel %vm496_vm8, %v493_v21, %v495_v25 }
  0xa9   : > { %561 = vmatpush1.msra.mxu0 %v497_v28  ;;  %837 = vmatpush3.msra.mxu1 %v499_v29 }
  0xaa   : > { %804 = vmatmul.mubr.msk.f32.vlgmr.msra.gmra.mrb[0].mxu0 %vm540_vm9, %v506_v27  ;;  %839 = vmatmul.mubr.msk.f32.vlgmr.msra.gmra.mrb[0].mxu1 %vm540_vm9, %v506_v27 }
  0xb8   : > { %v538_v30 = vpop.permute.xlu0 %537 }
 0x17d   : > { %v610_v31 = vpop.f32.mrb[0].mxu0  ;;  %v681_v32 = vpop.f32.mrb[0].mxu1 }
 0x17e   : > { %v611_v7 = vadd.f32 %v610_v31, %v538_v30  ;;  %v682_v33 = vadd.f32 %v681_v32, %v538_v30  ;;  %v612_v34 = vpop.f32.mrb[1].mxu0  ;;  %v840_v35 = vpop.f32.mrb[1].mxu1 }
 0x17f   : > { %v613_v36 = vadd.f32 %v612_v34, %v538_v30 }
 0x180   : > { %v685_v37 = vmax.f32 %v611_v7, 0.0  ;;  %v687_v38 = vmax.f32 %v682_v33, 0.0 }
 0x181   : > { %v686_v39 = vmax.f32 %v613_v36, 0.0 }
 0x182   : > { %688 = vst [vmem:[%s278_s20] sm:$0xff] %v685_v37  ;;  %690 = vst [vmem:[%s278_s20 + $0x10] sm:$0xff] %v687_v38 }
 0x183   : > { %689 = vst [vmem:[%s278_s20 + $0x8] sm:$0xff] %v686_v39 }
 0x184 PF: > { %s14_s17 = sadd.s32 1, %s1002_s17   ;;  %s1133_s15 = smov %s998_s16 }
 0x185   : > { %p11_p5 = scmp.ge.s32.totalorder %s14_s17, 4   ;;  %s1134_s16 = smov %s1136_s18 }
 0x187   :  { %13 = sbr.rel (!%p11_p5) target bundleno = 2 (0x2), region = 69 }

</bundles_post_ra>
